<compile_context>
chip_gen: v6e
topology: v6e:2x2x1
jax: 0.10.0
libtpu: 0.0.40
codegen_flags: <defaults>
</compile_context>

<pallas_src>
import jax
import jax.numpy as jnp
from jax.experimental import pallas as pl
from jax.experimental.pallas import tpu as pltpu


def _round_up(x, m):
    return ((x + m - 1) // m) * m


def _pick_tile(size_128, candidates=(1024, 512, 256, 128)):
    """Largest candidate (multiples of 128) that evenly divides size_128."""
    for c in candidates:
        if c <= size_128 and size_128 % c == 0:
            return c
    return 128


# ---------------------------------------------------------------------------
# Pass 1: support = x @ W
# ---------------------------------------------------------------------------
def _support_kernel(x_ref, w_ref, s_ref, acc_ref):
    k = pl.program_id(1)

    @pl.when(k == 0)
    def _():
        acc_ref[...] = jnp.zeros_like(acc_ref)

    acc_ref[...] += jnp.dot(x_ref[...], w_ref[...],
                            preferred_element_type=jnp.float32)

    @pl.when(k == pl.num_programs(1) - 1)
    def _():
        s_ref[...] = acc_ref[...].astype(s_ref.dtype)


# ---------------------------------------------------------------------------
# Pass 2: out = adj @ support + bias
# ---------------------------------------------------------------------------
def _aggregate_kernel(adj_ref, s_ref, b_ref, o_ref, acc_ref):
    k = pl.program_id(1)

    @pl.when(k == 0)
    def _():
        acc_ref[...] = jnp.zeros_like(acc_ref)

    acc_ref[...] += jnp.dot(adj_ref[...], s_ref[...],
                            preferred_element_type=jnp.float32)

    @pl.when(k == pl.num_programs(1) - 1)
    def _():
        o_ref[...] = (acc_ref[...] + b_ref[...]).astype(o_ref.dtype)


# ---------------------------------------------------------------------------
# VMEM budgeting helpers (double-buffered tiles + resident accumulator).
# ---------------------------------------------------------------------------
_VMEM_BUDGET = 40 * 1024 * 1024  # leave headroom on v7x (64 MiB physical)


def _support_vmem(tms, tkf, of):
    return (2 * tms * tkf * 2       # x tiles (bf16, 2 bufs)
            + 2 * tkf * of * 2      # W tiles
            + 2 * tms * of * 2      # support output tiles (bf16)
            + tms * of * 4)         # f32 accumulator


def _aggregate_vmem(tm, tk, of):
    return (2 * tm * tk * 2         # adj tiles (bf16, 2 bufs)
            + 2 * tk * of * 2       # support tiles
            + 2 * of * 4            # bias (resident)
            + 2 * tm * of * 4       # output tiles (f32)
            + tm * of * 4)          # f32 accumulator


def _shrink_tiles(tm, tk, of, vmem_fn):
    """Halve the larger tile (not below 128) until the estimate fits."""
    while vmem_fn(tm, tk, of) > _VMEM_BUDGET and (tm > 128 or tk > 128):
        if tk >= tm and tk > 128:
            tk //= 2
        elif tm > 128:
            tm //= 2
        else:
            tk //= 2
    return tm, tk


def _vmem_limit(est_bytes):
    return int(min(max(2 * est_bytes, 16 * 1024 * 1024), 48 * 1024 * 1024))


# ---------------------------------------------------------------------------
# Public wrapper
# ---------------------------------------------------------------------------
def graph_convolution(x, adj, weight, bias=None):
    """Pallas GCN layer. x: [N, in_f], adj: [N, N], weight: [in_f, out_f],
    bias: [out_f] or None. Returns [N, out_f] float32."""
    n, in_f = x.shape
    out_f = weight.shape[1]

    # Lane-dense padded sizes (zero padding keeps the math exact: zero adj
    # columns kill padded support rows; zero W columns give zero padded
    # output features).
    n_pad = _round_up(n, 128)
    in_f_pad = _round_up(in_f, 128)
    out_f_pad = _round_up(out_f, 128)

    x_p = jnp.zeros((n_pad, in_f_pad), jnp.bfloat16).at[:n, :in_f].set(
        x.astype(jnp.bfloat16))
    w_p = jnp.zeros((in_f_pad, out_f_pad), jnp.bfloat16).at[:in_f, :out_f].set(
        weight.astype(jnp.bfloat16))
    adj_p = jnp.zeros((n_pad, n_pad), jnp.bfloat16).at[:n, :n].set(
        adj.astype(jnp.bfloat16))
    b_p = jnp.zeros((1, out_f_pad), jnp.float32)
    if bias is not None:
        b_p = b_p.at[0, :out_f].set(bias.astype(jnp.float32))

    # ---- Pass 1: support = x @ W  -> [n_pad, out_f_pad] bf16 --------------
    tms = _pick_tile(n_pad, (512, 256, 128))
    tkf = _pick_tile(in_f_pad, (1024, 512, 256, 128))
    tms, tkf = _shrink_tiles(tms, tkf, out_f_pad, _support_vmem)
    grid1 = (n_pad // tms, in_f_pad // tkf)

    support = pl.pallas_call(
        _support_kernel,
        out_shape=jax.ShapeDtypeStruct((n_pad, out_f_pad), jnp.bfloat16),
        grid_spec=pltpu.PrefetchScalarGridSpec(
            num_scalar_prefetch=0,
            grid=grid1,
            in_specs=[
                pl.BlockSpec((tms, tkf), lambda i, k: (i, k)),        # x
                pl.BlockSpec((tkf, out_f_pad), lambda i, k: (k, 0)),  # W
            ],
            out_specs=pl.BlockSpec((tms, out_f_pad), lambda i, k: (i, 0)),
            scratch_shapes=[pltpu.VMEM((tms, out_f_pad), jnp.float32)],
        ),
        compiler_params=pltpu.CompilerParams(
            dimension_semantics=("parallel", "arbitrary"),
            vmem_limit_bytes=_vmem_limit(_support_vmem(tms, tkf, out_f_pad)),
        ),
        cost_estimate=pl.CostEstimate(
            flops=2 * n_pad * in_f_pad * out_f_pad,
            transcendentals=0,
            bytes_accessed=(n_pad * in_f_pad * 2
                            + grid1[0] * in_f_pad * out_f_pad * 2
                            + n_pad * out_f_pad * 2)),
    )(x_p, w_p)

    # ---- Pass 2: out = adj @ support + bias -> [n_pad, out_f_pad] f32 -----
    tm = _pick_tile(n_pad, (512, 256, 128))
    tk = _pick_tile(n_pad, (1024, 512, 256, 128))
    tm, tk = _shrink_tiles(tm, tk, out_f_pad, _aggregate_vmem)
    grid2 = (n_pad // tm, n_pad // tk)

    out_p = pl.pallas_call(
        _aggregate_kernel,
        out_shape=jax.ShapeDtypeStruct((n_pad, out_f_pad), jnp.float32),
        grid_spec=pltpu.PrefetchScalarGridSpec(
            num_scalar_prefetch=0,
            grid=grid2,
            in_specs=[
                pl.BlockSpec((tm, tk), lambda i, k: (i, k)),           # adj
                pl.BlockSpec((tk, out_f_pad), lambda i, k: (k, 0)),    # support
                pl.BlockSpec((1, out_f_pad), lambda i, k: (0, 0)),     # bias
            ],
            out_specs=pl.BlockSpec((tm, out_f_pad), lambda i, k: (i, 0)),
            scratch_shapes=[pltpu.VMEM((tm, out_f_pad), jnp.float32)],
        ),
        compiler_params=pltpu.CompilerParams(
            dimension_semantics=("parallel", "arbitrary"),
            vmem_limit_bytes=_vmem_limit(_aggregate_vmem(tm, tk, out_f_pad)),
        ),
        cost_estimate=pl.CostEstimate(
            flops=2 * n_pad * n_pad * out_f_pad,
            transcendentals=0,
            bytes_accessed=(n_pad * n_pad * 2
                            + grid2[0] * n_pad * out_f_pad * 2
                            + n_pad * out_f_pad * 4)),
    )(adj_p, support, b_p)

    return out_p[:n, :out_f]


def init_params(key, in_features, out_features, bias=True):
    """Deterministic init matching reset_parameters(): U(-stdv, stdv),
    stdv = 1/sqrt(out_features)."""
    stdv = 1.0 / (out_features ** 0.5)
    kw, kb = jax.random.split(key)
    weight = jax.random.uniform(
        kw, (in_features, out_features), jnp.float32, minval=-stdv, maxval=stdv)
    b = None
    if bias:
        b = jax.random.uniform(
            kb, (out_features,), jnp.float32, minval=-stdv, maxval=stdv)
    return weight, b


if __name__ == "__main__":
    key = jax.random.PRNGKey(0)
    k_x, k_adj, k_param = jax.random.split(key, 3)

    N, IN_F, OUT_F = 16, 8, 32

    x = jax.random.normal(k_x, (N, IN_F), dtype=jnp.float32)
    # Symmetric adjacency (deterministic).
    a_raw = jax.random.uniform(k_adj, (N, N), dtype=jnp.float32)
    adj = (a_raw + a_raw.T) * 0.5

    weight, bias = init_params(k_param, IN_F, OUT_F, bias=True)

    out = graph_convolution(x, adj, weight, bias)
    out = jax.block_until_ready(out)

    # Reference check in plain JAX (same math as the PyTorch forward).
    # Tolerances loosened vs f32 because the kernel feeds the MXU bf16
    # operands (with f32 accumulation).
    ref = adj @ (x @ weight) + bias
    assert out.shape == (N, OUT_F)
    assert jnp.allclose(out, ref, atol=3e-2, rtol=3e-2), (
        float(jnp.max(jnp.abs(out - ref))))

    print("KERNEL_OK")
</pallas_src>

<mosaic_0001>
module attributes {stable_mosaic.version = 11 : i64} {
  func.func @_support_kernel(%arg0: i32, %arg1: i32, %arg2: memref<128x128xbf16, #tpu.memory_space<vmem>>, %arg3: memref<128x128xbf16, #tpu.memory_space<vmem>>, %arg4: memref<128x128xbf16, #tpu.memory_space<vmem>>, %arg5: memref<128x128xf32, #tpu.memory_space<vmem>>) attributes {dimension_semantics = [#tpu.dimension_semantics<parallel>, #tpu.dimension_semantics<arbitrary>], iteration_bounds = array<i64: 1, 1>, scalar_prefetch = 0 : i64, scratch_operands = 1 : i64, tpu.core_type = #tpu.core_type<tc>, window_params = [{transform_indices = @transform_0, window_bounds = array<i64: 128, 128>}, {transform_indices = @transform_1, window_bounds = array<i64: 128, 128>}, {transform_indices = @transform_2, window_bounds = array<i64: 128, 128>}]} {
    %c0_i32 = arith.constant 0 : i32
    %0 = arith.cmpi eq, %arg1, %c0_i32 : i32
    %1 = arith.extui %0 : i1 to i32
    %c0_i32_0 = arith.constant 0 : i32
    %2 = arith.cmpi ne, %1, %c0_i32_0 : i32
    scf.if %2 {
      %cst_10 = arith.constant 0.000000e+00 : f32
      %12 = vector.broadcast %cst_10 : f32 to vector<128x128xf32>
      %c0_11 = arith.constant 0 : index
      %c0_12 = arith.constant 0 : index
      %13 = vector.load %arg5[%c0_11, %c0_12] : memref<128x128xf32, #tpu.memory_space<vmem>>, vector<128x128xf32>
      tpu.vector_store %arg5[%c0_11, %c0_12], %12 {strides = array<i32>} : memref<128x128xf32, #tpu.memory_space<vmem>>, vector<128x128xf32>,
    } else {
    }
    %c0 = arith.constant 0 : index
    %c0_1 = arith.constant 0 : index
    %3 = vector.load %arg5[%c0, %c0_1] : memref<128x128xf32, #tpu.memory_space<vmem>>, vector<128x128xf32>
    %c0_2 = arith.constant 0 : index
    %c0_3 = arith.constant 0 : index
    %4 = vector.load %arg2[%c0_2, %c0_3] : memref<128x128xbf16, #tpu.memory_space<vmem>>, vector<128x128xbf16>
    %c0_4 = arith.constant 0 : index
    %c0_5 = arith.constant 0 : index
    %5 = vector.load %arg3[%c0_4, %c0_5] : memref<128x128xbf16, #tpu.memory_space<vmem>>, vector<128x128xbf16>
    %cst = arith.constant dense<0.000000e+00> : vector<128x128xf32>
    %6 = tpu.matmul %4, %5, %cst {dimension_numbers = #tpu.dot_dimension_numbers<[1], [0], [0], [1], [0, 0, 1, 1], [], []>} : vector<128x128xbf16>, vector<128x128xbf16>, vector<128x128xf32> -> vector<128x128xf32>
    %7 = arith.addf %3, %6 : vector<128x128xf32>
    %c0_6 = arith.constant 0 : index
    %c0_7 = arith.constant 0 : index
    %8 = vector.load %arg5[%c0_6, %c0_7] : memref<128x128xf32, #tpu.memory_space<vmem>>, vector<128x128xf32>
    tpu.vector_store %arg5[%c0_6, %c0_7], %7 {strides = array<i32>} : memref<128x128xf32, #tpu.memory_space<vmem>>, vector<128x128xf32>,
    %c0_i32_8 = arith.constant 0 : i32
    %9 = arith.cmpi eq, %arg1, %c0_i32_8 : i32
    %10 = arith.extui %9 : i1 to i32
    %c0_i32_9 = arith.constant 0 : i32
    %11 = arith.cmpi ne, %10, %c0_i32_9 : i32
    scf.if %11 {
      %c0_10 = arith.constant 0 : index
      %c0_11 = arith.constant 0 : index
      %12 = vector.load %arg5[%c0_10, %c0_11] : memref<128x128xf32, #tpu.memory_space<vmem>>, vector<128x128xf32>
      %13 = arith.truncf %12 : vector<128x128xf32> to vector<128x128xbf16>
      %c0_12 = arith.constant 0 : index
      %c0_13 = arith.constant 0 : index
      %14 = vector.load %arg4[%c0_12, %c0_13] : memref<128x128xbf16, #tpu.memory_space<vmem>>, vector<128x128xbf16>
      tpu.vector_store %arg4[%c0_12, %c0_13], %13 {strides = array<i32>} : memref<128x128xbf16, #tpu.memory_space<vmem>>, vector<128x128xbf16>,
    } else {
    }
    return
  }
  func.func @transform_0(%arg0: i32, %arg1: i32) -> (i32, i32) {
    %c0_i32 = arith.constant 0 : i32
    return %arg0, %arg1 : i32, i32
  }
  func.func @transform_1(%arg0: i32, %arg1: i32) -> (i32, i32) {
    %c0_i32 = arith.constant 0 : i32
    %c0_i32_0 = arith.constant 0 : i32
    return %arg1, %c0_i32 : i32, i32
  }
  func.func @transform_2(%arg0: i32, %arg1: i32) -> (i32, i32) {
    %c0_i32 = arith.constant 0 : i32
    %c0_i32_0 = arith.constant 0 : i32
    return %arg0, %c0_i32 : i32, i32
  }
}

</mosaic_0001>

<bundles_post_ra>
// kernel: tpu_custom_call.1
= control target key start
LH: loop header
LB: loop body
LE: loop exit
PB: predicated region body
PF: predicated region fallthrough
CT: control target
= control target key end

     0   :  { %7 = vsyncpa [#allocation4], 0  ;;  %s735_s0 = inlined_call_operand.hbm [shape: bf16[128,128], index: 0, kind: input, shape index: {}]   ;;  %s736_s1 = inlined_call_operand.hbm [shape: bf16[128,128], index: 1, kind: input, shape index: {}]   ;;  %s737_s2 = inlined_call_operand.hbm [shape: bf16[128,128], index: 2, kind: output, shape index: {}]  }
   0x1   :  { %8 = vsyncpa [#allocation7], 0 }
   0x2   :  { %9 = vsyncpa [#allocation5], 0  ;;  %s697_s9 = smov [#allocation3]  }
   0x3   :  { %s15_s10 = sshll.u32 %s697_s9, 4  ;;  %s16_s10 = int_to_ptr.vmem [resolvable:$true] %s15_s10 }
   0x4   :  { %s639_s11 = scalar_lea.vmem %s16_s10, 1024  ;;  %p644_p1 = scmp.lt.s32.totalorder %s16_s10, %s16_s10 }
   0x5   :  { %p640_p0 = scmp.ne.s32.totalorder %s16_s10, %s639_s11  ;;  %p645_p2 = scmp.lt.s32.totalorder %s639_s11, %s639_s11 }
   0x7   :  { %p646_p3 = por %p645_p2, %p644_p1 }
   0x9   :  { %p647_p4 = pnand %p646_p3, %p640_p0 }
   0xb   :  { %650 = shalt.err (!%p647_p4)
}
   0xc   :  { %s698_s12 = smov 64   ;;  %s699_s13 = smov 4  }
   0xd   :  { %21 = dma.hbm_to_vmem [thread:$0]  %s735_s0, 1024, %s16_s10, [#allocation4], %s698_s12, %s698_s12, %s699_s13  }
   0xe   :  { %s700_s16 = smov [#allocation6]  }
   0xf   :  { %s27_s17 = sshll.u32 %s700_s16, 4  ;;  %s28_s17 = int_to_ptr.vmem [resolvable:$true] %s27_s17 }
  0x10   :  { %s659_s18 = scalar_lea.vmem %s28_s17, 1024  ;;  %p664_p6 = scmp.lt.s32.totalorder %s28_s17, %s28_s17 }
  0x11   :  { %p660_p5 = scmp.ne.s32.totalorder %s28_s17, %s659_s18  ;;  %p665_p7 = scmp.lt.s32.totalorder %s659_s18, %s659_s18 }
  0x13   :  { %p666_p8 = por %p665_p7, %p664_p6 }
  0x15   :  { %p667_p9 = pnand %p666_p8, %p660_p5 }
  0x17   :  { %670 = shalt.err (!%p667_p9)
}
  0x18   :  { %33 = dma.hbm_to_vmem [thread:$0]  %s736_s1, 1024, %s28_s17, [#allocation7], %s698_s12, %s698_s12, %s699_s13  }
  0x19   :  { %691 = dma.done.wait [#allocation4], 1024  }
  0x1a   :  { %692 = vsyncadd [#allocation4], 4294966272 }
  0x1b   :  { %693 = dma.done.wait [#allocation7], 1024  }
  0x1c   :  { %694 = vsyncadd [#allocation7], 4294966272  ;;  %v615_v0 = vld [vmem:[#allocation6 + $0x38] sm:$0xff]   ;;  %v616_v1 = vld [vmem:[#allocation6 + $0x30] sm:$0xff]   ;;  %s701_s0 = smov [#allocation8]  }
  0x1d   :  { %562 = vmatprep.subr.bf16.mxu0 %v615_v0  ;;  %594 = vmatprep.subr.bf16.mxu1 %v615_v0  ;;  %v617_v2 = vld [vmem:[#allocation6 + $0x28] sm:$0xff]   ;;  %v618_v3 = vld [vmem:[#allocation6 + $0x20] sm:$0xff]   ;;  %v619_v6 = vld [vmem:[#allocation6 + $0x18] sm:$0xff]   ;;  %s438_s1 = sshll.u32 %s701_s0, 4  ;;  %s439_s1 = int_to_ptr.vmem [resolvable:$true] %s438_s1 }
  0x1e   :  { %563 = vmatpush3.bf16.msra.mxu0 %v615_v0  ;;  %602 = vmatpush3.bf16.msra.mxu1 %v615_v0  ;;  %v623_v4 = vld [vmem:[#allocation3] sm:$0xff]   ;;  %v620_v7 = vld [vmem:[#allocation6 + $0x10] sm:$0xff]   ;;  %v621_v8 = vld [vmem:[#allocation6 + $0x8] sm:$0xff]   ;;  %s671_s21 = scalar_lea.vmem %s439_s1, 1024  ;;  %p676_p11 = scmp.lt.s32.totalorder %s439_s1, %s439_s1 }
  0x1f   :  { %564 = vmatprep.subr.bf16.mxu0 %v616_v1  ;;  %595 = vmatprep.subr.bf16.mxu1 %v616_v1  ;;  %v624_v5 = vld [vmem:[#allocation3 + $0x20] sm:$0xff]   ;;  %v625_v10 = vld [vmem:[#allocation3 + $0x8] sm:$0xff]   ;;  %v627_v12 = vld [vmem:[#allocation3 + $0x10] sm:$0xff]   ;;  %p672_p10 = scmp.ne.s32.totalorder %s439_s1, %s671_s21  ;;  %p677_p12 = scmp.lt.s32.totalorder %s671_s21, %s671_s21 }
  0x20   :  { %578 = vmatprep.mubr.bf16.mxu0 %v623_v4  ;;  %586 = vmatprep.mubr.bf16.mxu1 %v624_v5  ;;  %v622_v9 = vld [vmem:[#allocation6] sm:$0xff]   ;;  %v626_v11 = vld [vmem:[#allocation3 + $0x28] sm:$0xff]   ;;  %v628_v13 = vld [vmem:[#allocation3 + $0x30] sm:$0xff]  }
  0x21   :  { %v629_v14 = vld [vmem:[#allocation3 + $0x18] sm:$0xff]   ;;  %p678_p13 = por %p677_p12, %p676_p11 }
  0x22   :  { %565 = vmatpush3.bf16.msra.mxu0 %v616_v1  ;;  %603 = vmatpush3.bf16.msra.mxu1 %v616_v1  ;;  %v630_v15 = vld [vmem:[#allocation3 + $0x38] sm:$0xff]  }
  0x23   :  { %566 = vmatprep.subr.bf16.mxu0 %v617_v2  ;;  %596 = vmatprep.subr.bf16.mxu1 %v617_v2  ;;  %p679_p0 = pnand %p678_p13, %p672_p10 }
  0x26   :  { %567 = vmatpush3.bf16.msra.mxu0 %v617_v2  ;;  %604 = vmatpush3.bf16.msra.mxu1 %v617_v2 }
  0x27   :  { %568 = vmatprep.subr.bf16.mxu0 %v618_v3  ;;  %597 = vmatprep.subr.bf16.mxu1 %v618_v3 }
  0x2a   :  { %569 = vmatpush3.bf16.msra.mxu0 %v618_v3  ;;  %605 = vmatpush3.bf16.msra.mxu1 %v618_v3 }
  0x2b   :  { %570 = vmatprep.subr.bf16.mxu0 %v619_v6  ;;  %598 = vmatprep.subr.bf16.mxu1 %v619_v6 }
  0x2e   :  { %571 = vmatpush3.bf16.msra.mxu0 %v619_v6  ;;  %606 = vmatpush3.bf16.msra.mxu1 %v619_v6 }
  0x2f   :  { %572 = vmatprep.subr.bf16.mxu0 %v620_v7  ;;  %599 = vmatprep.subr.bf16.mxu1 %v620_v7 }
  0x32   :  { %573 = vmatpush3.bf16.msra.mxu0 %v620_v7  ;;  %607 = vmatpush3.bf16.msra.mxu1 %v620_v7 }
  0x33   :  { %574 = vmatprep.subr.bf16.mxu0 %v621_v8  ;;  %600 = vmatprep.subr.bf16.mxu1 %v621_v8 }
  0x36   :  { %575 = vmatpush3.bf16.msra.mxu0 %v621_v8  ;;  %608 = vmatpush3.bf16.msra.mxu1 %v621_v8 }
  0x37   :  { %576 = vmatprep.subr.bf16.mxu0 %v622_v9  ;;  %601 = vmatprep.subr.bf16.mxu1 %v622_v9 }
  0x3a   :  { %577 = vmatpush3.bf16.msra.mxu0 %v622_v9  ;;  %609 = vmatpush3.bf16.msra.mxu1 %v622_v9 }
  0x3d   :  { %579 = vmatmul.mubr.bf16.vlgmr.msra.gmra.mxu0 %v625_v10  ;;  %587 = vmatmul.mubr.bf16.vlgmr.msra.gmra.mxu1 %v626_v11 }
  0x3e   :  { %582 = vmatprep.mubr.bf16.mxu0 %v627_v12  ;;  %590 = vmatprep.mubr.bf16.mxu1 %v628_v13 }
  0x45   :  { %583 = vmatmul.mubr.bf16.gmra.mxu0 %v629_v14  ;;  %591 = vmatmul.mubr.bf16.gmra.mxu1 %v630_v15 }
  0xfd   :  { %v580_v16 = vpop.f32.mrf.mxu0  ;;  %v588_v17 = vpop.f32.mrf.mxu1 }
  0xff   :  { %v239_v18 = vpop.f32.mrf.mxu0  ;;  %v271_v19 = vpop.f32.mrf.mxu1 }
 0x101   :  { %v581_v20 = vpop.f32.mrf.mxu0  ;;  %v589_v21 = vpop.f32.mrf.mxu1 }
 0x102   :  { %v507_v22 = vpack.c.bf16 %v581_v20, %v580_v16  ;;  %v527_v23 = vpack.c.bf16 %v589_v21, %v588_v17 }
 0x103   :  { %v242_v24 = vpop.f32.mrf.mxu0  ;;  %v274_v25 = vpop.f32.mrf.mxu1 }
 0x104   :  { %539 = vst [vmem:[#allocation8 + $0x8] sm:$0xff] %v507_v22   ;;  %543 = vst [vmem:[#allocation8 + $0x28] sm:$0xff] %v527_v23   ;;  %v502_v26 = vpack.c.bf16 %v242_v24, %v239_v18  ;;  %v522_v27 = vpack.c.bf16 %v274_v25, %v271_v19 }
 0x105   :  { %v584_v28 = vpop.f32.mrf.mxu0  ;;  %v592_v29 = vpop.f32.mrf.mxu1 }
 0x106   :  { %503 = vst [vmem:[#allocation8] sm:$0xff] %v502_v26   ;;  %542 = vst [vmem:[#allocation8 + $0x20] sm:$0xff] %v522_v27  }
 0x107   :  { %v255_v30 = vpop.f32.mrf.mxu0  ;;  %v287_v31 = vpop.f32.mrf.mxu1 }
 0x109   :  { %v585_v32 = vpop.f32.mrf.mxu0  ;;  %v593_v33 = vpop.f32.mrf.mxu1 }
 0x10a   :  { %v517_v34 = vpack.c.bf16 %v585_v32, %v584_v28  ;;  %v537_v35 = vpack.c.bf16 %v593_v33, %v592_v29 }
 0x10b   :  { %v258_v36 = vpop.f32.mrf.mxu0  ;;  %v290_v37 = vpop.f32.mrf.mxu1 }
 0x10c   :  { %541 = vst [vmem:[#allocation8 + $0x18] sm:$0xff] %v517_v34   ;;  %545 = vst [vmem:[#allocation8 + $0x38] sm:$0xff] %v537_v35   ;;  %v512_v38 = vpack.c.bf16 %v258_v36, %v255_v30  ;;  %v532_v39 = vpack.c.bf16 %v290_v37, %v287_v31 }
 0x10e   :  { %540 = vst [vmem:[#allocation8 + $0x10] sm:$0xff] %v512_v38   ;;  %544 = vst [vmem:[#allocation8 + $0x30] sm:$0xff] %v532_v39  }
 0x10f   :  { %682 = shalt.err (!%p679_p0)
}
 0x110   :  { %444 = dma.vmem_to_hbm [thread:$0]  %s439_s1, 1024, %s737_s2, [#allocation5], %s698_s12, %s698_s12, %s699_s13  }
 0x111   :  { %695 = dma.done.wait [#allocation5], 1024  }
 0x112   :  { %696 = vsyncadd [#allocation5], 4294966272 }
 0x113   :  { %448 = vsyncpa [#allocation4], 1 }
 0x114   :  { %449 = vsyncpa [#allocation7], 1 }
 0x115   :  { %450 = vsyncpa [#allocation5], 1 }

</bundles_post_ra>
